<compile_context>
chip_gen: v6e
topology: v6e:2x2x1
jax: 0.10.0
libtpu: 0.0.40
codegen_flags: <defaults>
</compile_context>

<pallas_src>
import functools

import jax
import jax.numpy as jnp
from jax.experimental import pallas as pl
from jax.experimental.pallas import tpu as pltpu

LANE = 128       # feature (lane) padding
ROW_PAD = 256    # node-count padding -> row tiles of 128/256 always divide N


def _pad_to(x, multiple, axis):
    pad = (-x.shape[axis]) % multiple
    if pad == 0:
        return x
    widths = [(0, 0)] * x.ndim
    widths[axis] = (0, pad)
    return jnp.pad(x, widths)


# ---------------------------------------------------------------------------
# Generation-aware VMEM budgets (v5e/v6e: 128 MiB parts, v7x: 64 MiB, 2 TCs)
# ---------------------------------------------------------------------------
def _tpu_vmem_info():
    try:
        cap = int(pltpu.get_tpu_info().vmem_capacity_bytes)
    except Exception:
        cap = 64 << 20                      # conservative fallback
    two_core = cap < (96 << 20)             # 64 MiB/TC parts (v7x) have 2 TCs
    return cap, two_core


def _vmem_limit_bytes():
    cap, _ = _tpu_vmem_info()
    return (96 << 20) if cap >= (96 << 20) else (48 << 20)


def _pick_tm(n):
    """Largest row tile whose double-buffered bf16 A slab fits the budget."""
    cap, two_core = _tpu_vmem_info()
    a_budget = (64 << 20) if cap >= (96 << 20) else (24 << 20)
    budget_tm = max(8, a_budget // (4 * n))       # 2 buffers * 2 bytes * tm * n
    upper = n // 2 if (two_core and n >= 16) else n  # keep both v7x cores busy
    for cand in (n, 8192, 4096, 2048, 1024, 512, 256, 128, 64, 32, 16, 8):
        if cand <= upper and cand <= budget_tm and n % cand == 0:
            return cand
    return 8


# ---------------------------------------------------------------------------
# Kernel 1: once-per-layer relation projection  HW[:, r*D:(r+1)*D] = H @ W_r
#   (comb already folded into W in plain JAX -> no in-grid combine work)
# ---------------------------------------------------------------------------
def _hw_kernel(h_ref, w_ref, o_ref):
    o_ref[...] = jnp.dot(h_ref[...], w_ref[...],
                         preferred_element_type=jnp.float32).astype(o_ref.dtype)


def relation_hw(h_bf16, w_flat_bf16, num_rel, *, tm, vmem_limit):
    n, d_in = h_bf16.shape
    d_total = w_flat_bf16.shape[1]
    assert d_total % num_rel == 0
    d_out = d_total // num_rel
    return pl.pallas_call(
        _hw_kernel,
        out_shape=jax.ShapeDtypeStruct((n, d_total), jnp.bfloat16),
        grid_spec=pltpu.PrefetchScalarGridSpec(
            num_scalar_prefetch=0,
            grid=(n // tm, num_rel),
            in_specs=[
                pl.BlockSpec((tm, d_in), lambda i, r: (i, 0)),    # H rows
                pl.BlockSpec((d_in, d_out), lambda i, r: (0, r)),  # W_r
            ],
            out_specs=pl.BlockSpec((tm, d_out), lambda i, r: (i, r)),
        ),
        compiler_params=pltpu.CompilerParams(
            dimension_semantics=("parallel", "parallel"),
            vmem_limit_bytes=vmem_limit),
    )(h_bf16, w_flat_bf16)


# ---------------------------------------------------------------------------
# Kernel 2: one RelGraphConv layer, grid = (row_tiles, relations)
# ---------------------------------------------------------------------------
def _rgcn_layer_kernel(a_ref, h_ref, hw_ref, wself_ref, b_ref,
                       o_ref, acc_ref, *, apply_relu, self_loop):
    r = pl.program_id(1)

    @pl.when(r == 0)
    def _():
        init = jnp.broadcast_to(b_ref[...], acc_ref.shape)       # bias
        if self_loop:
            init = init + jnp.dot(h_ref[...], wself_ref[...],    # self-loop term
                                  preferred_element_type=jnp.float32)
        acc_ref[...] = init

    # Message aggregation on the MXU (bf16 inputs, f32 accumulation):
    #   A[r, row_tile, :] @ HW_r          (HW_r precomputed, bf16)
    acc_ref[...] += jnp.dot(a_ref[...], hw_ref[...],
                            preferred_element_type=jnp.float32)

    @pl.when(r == pl.num_programs(1) - 1)
    def _():
        res = acc_ref[...]
        if apply_relu:
            res = jnp.maximum(res, 0.0)
        o_ref[...] = res.astype(o_ref.dtype)


def fold_relation_weights(comb, v_f32):
    """comb: (R,B) f32, v: (B, Din, Dout) f32 -> W_flat: (Din, R*Dout) bf16."""
    w_rel = jnp.einsum("rb,bio->rio", comb, v_f32)         # (R, Din, Dout), tiny
    d_in = v_f32.shape[1]
    return jnp.transpose(w_rel, (1, 0, 2)).reshape(d_in, -1).astype(jnp.bfloat16)


def rgcn_layer(adj_bf16, h_f32, comb, v_f32, wself_f32, bias, *,
               apply_relu, self_loop=True, tm=None):
    """One RelGraphConv layer (basis decomposition, dense adjacency).

    adj_bf16 : (R, N, N) bf16, norm folded in (A[r,i,j] = weight of edge j->i)
    h_f32    : (N, Din)  f32 node features (Din multiple of 128, N mult of 8)
    comb     : (R, B)    f32 basis-combination coefficients
    v_f32    : (B, Din, Dout) f32 basis weights
    wself_f32: (Din, Dout) f32 self-loop weight, bias: (1, Dout) f32
    returns  : (N, Dout) f32
    """
    num_rel, n, _ = adj_bf16.shape
    d_in, d_out = wself_f32.shape
    assert h_f32.shape == (n, d_in)

    if tm is None:
        tm = _pick_tm(n)
    assert n % tm == 0, "row tile must divide N"
    vmem_limit = _vmem_limit_bytes()

    h_bf16 = h_f32.astype(jnp.bfloat16)
    w_flat = fold_relation_weights(comb, v_f32)                 # (Din, R*Dout) bf16
    hw = relation_hw(h_bf16, w_flat, num_rel, tm=tm,
                     vmem_limit=vmem_limit)                     # (N, R*Dout) bf16
    wself_bf16 = wself_f32.astype(jnp.bfloat16)

    kernel = functools.partial(_rgcn_layer_kernel,
                               apply_relu=apply_relu, self_loop=self_loop)
    return pl.pallas_call(
        kernel,
        out_shape=jax.ShapeDtypeStruct((n, d_out), jnp.float32),
        grid_spec=pltpu.PrefetchScalarGridSpec(
            num_scalar_prefetch=0,
            grid=(n // tm, num_rel),
            in_specs=[
                pl.BlockSpec((pl.Squeezed(), tm, n), lambda i, r: (r, i, 0)),  # A rows
                pl.BlockSpec((tm, d_in), lambda i, r: (i, 0)),                 # H rows
                pl.BlockSpec((n, d_out), lambda i, r: (0, r)),                 # HW_r slab
                pl.BlockSpec((d_in, d_out), lambda i, r: (0, 0)),              # W_self
                pl.BlockSpec((1, d_out), lambda i, r: (0, 0)),                 # bias
            ],
            out_specs=pl.BlockSpec((tm, d_out), lambda i, r: (i, 0)),
            scratch_shapes=[pltpu.VMEM((tm, d_out), jnp.float32)],
        ),
        compiler_params=pltpu.CompilerParams(
            dimension_semantics=("parallel", "arbitrary"),   # rows || , rels reduce
            vmem_limit_bytes=vmem_limit,
        ),
    )(adj_bf16, h_bf16, hw, wself_bf16, bias)


# ---------------------------------------------------------------------------
# EmbeddingLayer (input layer) — small dense glue, eval-mode semantics.
# ---------------------------------------------------------------------------
def embedding_layer_forward(params, node_ids):
    p = params["embedding_layer"]
    text = jnp.take(p["norm_text_embeddings"], node_ids, axis=0)
    enc = jnp.maximum(text @ p["enc_w1"] + p["enc_b1"], 0.0)
    transformed_text = enc @ p["enc_w2"] + p["enc_b2"]
    domain = jnp.take(p["norm_domain_embeddings"], node_ids, axis=0)
    transformed_domain = domain @ p["p2e_w"] + p["p2e_b"]
    w = p["w"]
    return (1.0 - w) * transformed_domain + w * transformed_text


def linkpredict_forward(params, adj, node_ids, *, tm=None):
    """LinkPredict.forward == RGCN forward (embedding -> conv stack)."""
    d_true = params["hidden_dim"]
    n_true = adj.shape[1]
    h = embedding_layer_forward(params, node_ids)
    h = _pad_to(h, LANE, axis=1)                        # lane-dense features
    h = _pad_to(h, ROW_PAD, axis=0)                     # robust row tiling
    adj_p = _pad_to(_pad_to(adj, ROW_PAD, axis=1), ROW_PAD, axis=2)
    adj_bf16 = adj_p.astype(jnp.bfloat16)               # halve dominant A stream
    n_layers = len(params["conv_layers"])
    for idx, lp in enumerate(params["conv_layers"]):
        h = rgcn_layer(adj_bf16, h, lp["comb"], lp["v"], lp["w_self"],
                       lp["bias"], apply_relu=(idx < n_layers - 1),
                       self_loop=params["use_self_loop"], tm=tm)
    return h[:n_true, :d_true]


# ---------------------------------------------------------------------------
# Parameters (deterministic init mirroring LinkPredict / RGCN / EmbeddingLayer)
# ---------------------------------------------------------------------------
def make_linkpredict_params(key, *, num_nodes, text_dim, domain_dim, hidden_dim,
                            num_relations, num_bases, num_hidden_layers, w,
                            use_self_loop):
    d_pad = ((hidden_dim + LANE - 1) // LANE) * LANE
    num_rel_graph = 2 * num_relations          # forward + inverse relations
    keys = list(jax.random.split(key, 8 + num_hidden_layers))

    def nrm(k, shape, scale):
        return jax.random.normal(k, shape, jnp.float32) * scale

    def minmax_norm(x):
        return (x - x.min()) / (x.max() - x.min())

    emb_layer = dict(
        norm_text_embeddings=minmax_norm(
            jax.random.normal(keys[0], (num_nodes, text_dim), jnp.float32)),
        norm_domain_embeddings=minmax_norm(
            jax.random.normal(keys[1], (num_nodes, domain_dim), jnp.float32)),
        enc_w1=nrm(keys[2], (text_dim, 2 * hidden_dim), text_dim ** -0.5),
        enc_b1=jnp.zeros((2 * hidden_dim,), jnp.float32),
        enc_w2=nrm(keys[3], (2 * hidden_dim, hidden_dim),
                   (2.0 * hidden_dim) ** -0.5),
        enc_b2=jnp.zeros((hidden_dim,), jnp.float32),
        p2e_w=nrm(keys[4], (domain_dim, hidden_dim), domain_dim ** -0.5),
        p2e_b=jnp.zeros((hidden_dim,), jnp.float32),
        w=w,
    )

    def conv_layer(k):
        k1, k2, k3, k4 = jax.random.split(k, 4)
        v = nrm(k1, (num_bases, hidden_dim, hidden_dim), 0.1)
        comb = jax.random.normal(k2, (num_rel_graph, num_bases), jnp.float32)
        w_self = nrm(k3, (hidden_dim, hidden_dim), 0.1)
        bias = nrm(k4, (1, hidden_dim), 0.01)
        # zero-pad feature dims to a lane-dense multiple of 128
        pad = d_pad - hidden_dim
        v = jnp.pad(v, ((0, 0), (0, pad), (0, pad)))
        w_self = jnp.pad(w_self, ((0, pad), (0, pad)))
        bias = jnp.pad(bias, ((0, 0), (0, pad)))
        return dict(comb=comb, v=v, w_self=w_self, bias=bias)   # all f32

    conv_layers = [conv_layer(keys[5 + i]) for i in range(num_hidden_layers)]
    return dict(embedding_layer=emb_layer, conv_layers=conv_layers,
                hidden_dim=hidden_dim, use_self_loop=use_self_loop,
                num_rel_graph=num_rel_graph)


# ---------------------------------------------------------------------------
# Pure-JAX references
# ---------------------------------------------------------------------------
def _reference_forward(params, adj, node_ids):
    """Mirrors the kernel's bf16-in / f32-accumulate numerics exactly."""
    d_true = params["hidden_dim"]
    n_true = adj.shape[1]
    h = embedding_layer_forward(params, node_ids)
    h = _pad_to(h, LANE, axis=1)
    h = _pad_to(h, ROW_PAD, axis=0)
    adj_p = _pad_to(_pad_to(adj, ROW_PAD, axis=1), ROW_PAD, axis=2)
    adj_bf16 = adj_p.astype(jnp.bfloat16)
    d_pad = h.shape[1]
    n_layers = len(params["conv_layers"])
    for idx, lp in enumerate(params["conv_layers"]):
        w_flat = fold_relation_weights(lp["comb"], lp["v"])     # (Dp, R*Dp) bf16
        h_bf = h.astype(jnp.bfloat16)
        hw = jnp.dot(h_bf, w_flat,
                     preferred_element_type=jnp.float32).astype(jnp.bfloat16)
        acc = jnp.broadcast_to(lp["bias"], (h.shape[0], d_pad)).astype(jnp.float32)
        if params["use_self_loop"]:
            acc = acc + jnp.dot(h_bf, lp["w_self"].astype(jnp.bfloat16),
                                preferred_element_type=jnp.float32)
        for r in range(adj_bf16.shape[0]):
            acc = acc + jnp.dot(adj_bf16[r], hw[:, r * d_pad:(r + 1) * d_pad],
                                preferred_element_type=jnp.float32)
        h = jnp.maximum(acc, 0.0) if idx < n_layers - 1 else acc
    return h[:n_true, :d_true]


def _reference_forward_f32(params, adj, node_ids):
    """Full-precision reference (no bf16 anywhere in the conv stack)."""
    d_true = params["hidden_dim"]
    n_true = adj.shape[1]
    h = embedding_layer_forward(params, node_ids)
    h = _pad_to(h, LANE, axis=1)
    h = _pad_to(h, ROW_PAD, axis=0)
    adj_p = _pad_to(_pad_to(adj, ROW_PAD, axis=1), ROW_PAD, axis=2)
    n_layers = len(params["conv_layers"])
    for idx, lp in enumerate(params["conv_layers"]):
        w_rel = jnp.einsum("rb,bio->rio", lp["comb"], lp["v"])
        acc = jnp.broadcast_to(lp["bias"],
                               (h.shape[0], lp["bias"].shape[1])).astype(jnp.float32)
        if params["use_self_loop"]:
            acc = acc + h @ lp["w_self"]
        for r in range(adj_p.shape[0]):
            acc = acc + adj_p[r] @ (h @ w_rel[r])
        h = jnp.maximum(acc, 0.0) if idx < n_layers - 1 else acc
    return h[:n_true, :d_true]


if __name__ == "__main__":
    key = jax.random.PRNGKey(0)
    k_graph, k_param = jax.random.split(key)

    num_nodes = 256
    text_dim = 48
    domain_dim = 24
    hidden_dim = 64
    num_relations = 4           # graph carries 2*num_relations planes
    num_bases = 2
    num_hidden_layers = 2
    w_mix = 0.5

    params = make_linkpredict_params(
        k_param, num_nodes=num_nodes, text_dim=text_dim, domain_dim=domain_dim,
        hidden_dim=hidden_dim, num_relations=num_relations, num_bases=num_bases,
        num_hidden_layers=num_hidden_layers, w=w_mix, use_self_loop=True)

    # Random per-relation adjacency; edge `norm` (1/in-degree) folded in.
    num_rel_graph = params["num_rel_graph"]
    adj_raw = (jax.random.uniform(
        k_graph, (num_rel_graph, num_nodes, num_nodes)) < 0.05).astype(jnp.float32)
    in_deg = jnp.maximum(adj_raw.sum(axis=-1, keepdims=True), 1.0)
    adj = adj_raw / in_deg

    node_ids = jnp.arange(num_nodes, dtype=jnp.int32)

    # tm=None exercises the generation-aware auto tile pick.
    out = jax.block_until_ready(linkpredict_forward(params, adj, node_ids))

    ref = jax.block_until_ready(_reference_forward(params, adj, node_ids))
    assert out.shape == (num_nodes, hidden_dim)
    assert bool(jnp.all(jnp.isfinite(out)))
    assert jnp.allclose(out, ref, atol=1e-3, rtol=1e-3), \
        float(jnp.max(jnp.abs(out - ref)))

    # Separate drift check vs. a pure-f32 reference (bf16 quantization error only).
    ref32 = _reference_forward_f32(params, adj, node_ids)
    drift = float(jnp.max(jnp.abs(out - ref32)) / (jnp.max(jnp.abs(ref32)) + 1e-6))
    assert drift < 0.15, drift

    print("KERNEL_OK")
</pallas_src>

<mosaic_0001>
module attributes {stable_mosaic.version = 11 : i64} {
  func.func @_hw_kernel(%arg0: i32, %arg1: i32, %arg2: memref<128x128xbf16, #tpu.memory_space<vmem>>, %arg3: memref<128x128xbf16, #tpu.memory_space<vmem>>, %arg4: memref<128x128xbf16, #tpu.memory_space<vmem>>) attributes {dimension_semantics = [#tpu.dimension_semantics<parallel>, #tpu.dimension_semantics<parallel>], iteration_bounds = array<i64: 2, 8>, scalar_prefetch = 0 : i64, scratch_operands = 0 : i64, tpu.core_type = #tpu.core_type<tc>, window_params = [{transform_indices = @transform_0, window_bounds = array<i64: 128, 128>}, {transform_indices = @transform_1, window_bounds = array<i64: 128, 128>}, {transform_indices = @transform_2, window_bounds = array<i64: 128, 128>}]} {
    %c0 = arith.constant 0 : index
    %c0_0 = arith.constant 0 : index
    %0 = vector.load %arg2[%c0, %c0_0] : memref<128x128xbf16, #tpu.memory_space<vmem>>, vector<128x128xbf16>
    %c0_1 = arith.constant 0 : index
    %c0_2 = arith.constant 0 : index
    %1 = vector.load %arg3[%c0_1, %c0_2] : memref<128x128xbf16, #tpu.memory_space<vmem>>, vector<128x128xbf16>
    %cst = arith.constant dense<0.000000e+00> : vector<128x128xf32>
    %2 = tpu.matmul %0, %1, %cst {dimension_numbers = #tpu.dot_dimension_numbers<[1], [0], [0], [1], [0, 0, 1, 1], [], []>} : vector<128x128xbf16>, vector<128x128xbf16>, vector<128x128xf32> -> vector<128x128xf32>
    %3 = arith.truncf %2 : vector<128x128xf32> to vector<128x128xbf16>
    %c0_3 = arith.constant 0 : index
    %c0_4 = arith.constant 0 : index
    %4 = vector.load %arg4[%c0_3, %c0_4] : memref<128x128xbf16, #tpu.memory_space<vmem>>, vector<128x128xbf16>
    tpu.vector_store %arg4[%c0_3, %c0_4], %3 {strides = array<i32>} : memref<128x128xbf16, #tpu.memory_space<vmem>>, vector<128x128xbf16>,
    return
  }
  func.func @transform_0(%arg0: i32, %arg1: i32) -> (i32, i32) {
    %c0_i32 = arith.constant 0 : i32
    %c0_i32_0 = arith.constant 0 : i32
    return %arg0, %c0_i32 : i32, i32
  }
  func.func @transform_1(%arg0: i32, %arg1: i32) -> (i32, i32) {
    %c0_i32 = arith.constant 0 : i32
    %c0_i32_0 = arith.constant 0 : i32
    return %c0_i32, %arg1 : i32, i32
  }
  func.func @transform_2(%arg0: i32, %arg1: i32) -> (i32, i32) {
    %c0_i32 = arith.constant 0 : i32
    return %arg0, %arg1 : i32, i32
  }
}

</mosaic_0001>

<bundles_post_ra>
// kernel: tpu_custom_call.1
= control target key start
LH: loop header
LB: loop body
LE: loop exit
PB: predicated region body
PF: predicated region fallthrough
CT: control target
= control target key end

     0   :  { %s1523_s0 = inlined_call_operand.hbm [shape: bf16[256,128], index: 0, kind: input, shape index: {}]   ;;  %s1524_s1 = inlined_call_operand.hbm [shape: bf16[128,1024], index: 1, kind: input, shape index: {}]   ;;  %s1525_s2 = inlined_call_operand.hbm [shape: bf16[256,1024], index: 2, kind: output, shape index: {}]  }
   0x1   :  { %1535 = sst [smem:[#allocation17_spill]] %s1523_s0 }
   0x2   :  { %1536 = sst [smem:[#allocation18_spill]] %s1525_s2 }
   0x3   :  { %7 = vsyncpa [#allocation3], 0 }
   0x4   :  { %9 = vsyncpa [#allocation3 + $0x1], 0 }
   0x5   :  { %10 = vsyncpa [#allocation6], 0 }
   0x6   :  { %12 = vsyncpa [#allocation6 + $0x1], 0 }
   0x7   :  { %13 = vsyncpa [#allocation4], 0 }
   0x8   :  { %15 = vsyncpa [#allocation4 + $0x1], 0  ;;  %s1211_s9 = smov 0   ;;  %s1213_s10 = smov 0  }
   0x9   :  { %s1215_s11 = smov 0   ;;  %s1217_s12 = smov 0  }
   0xa   :  { %s1219_s13 = smov 0   ;;  %s1221_s14 = smov 0  }
   0xb   :  { %s1223_s15 = smov 0   ;;  %s1225_s16 = smov 0  }
   0xc   :  { %s1227_s17 = smov 0   ;;  %s1229_s18 = smov 0  }
   0xd   :  { %s1231_s19 = smov 0   ;;  %s1233_s20 = smov 0  }
   0xe   :  { %s1235_s21 = smov 0   ;;  %s1237_s22 = smov 0  }
   0xf LB: > { %1537 = sst [smem:[#allocation11_spill]] %s1169_s18  ;;  %s648_s23 = sadd.s32 4294967295, %s1185_s22   ;;  %s1185_s22 = sphi %s1237_s22, %s21_s22   ;;  %s1181_s21 = sphi %s1235_s21, %s1567_s21   ;;  %s1177_s20 = sphi %s1233_s20, %s1579_s20   ;;  %s1173_s19 = sphi %s1231_s19, %s1565_s19   ;;  %s1169_s18 = sphi %s1229_s18, %s1578_s18   ;;  %s1165_s17 = sphi %s1227_s17, %s1577_s17   ;;  %s1161_s16 = sphi %s1225_s16, %s1576_s16   ;;  %s1157_s15 = sphi %s1223_s15, %s1575_s15   ;;  %s1153_s14 = sphi %s1221_s14, %s1574_s14   ;;  %s1149_s13 = sphi %s1219_s13, %s1573_s13   ;;  %s1145_s12 = sphi %s1217_s12, %s1572_s12   ;;  %s1141_s11 = sphi %s1215_s11, %s1571_s11   ;;  %s1137_s10 = sphi %s1213_s10, %s1570_s10   ;;  %s1133_s9 = sphi %s1211_s9, %s1569_s9  }
  0x10   : > { %1538 = sst [smem:[#allocation12_spill]] %s1181_s21  ;;  %p47_p0 = scmp.ne.s32.totalorder %s1165_s17, %s1161_s16 }
  0x11   : > { %p48_p1 = scmp.eq.s32.totalorder %s1185_s22, 0  ;;  %p53_p2 = scmp.ne.s32.totalorder %s1161_s16, %s1157_s15 }
  0x12   : > { %p1286_p3 = scmp.eq.s32.totalorder %s648_s23, 0  ;;  %p1290_p4 = scmp.eq.s32.totalorder %s648_s23, 15 }
  0x13   : > { %p49_p5 = por %p48_p1, %p47_p0  ;;  %p845_p7 = scmp.lt.s32.totalorder %s1185_s22, 16 }
  0x14   : > { %p1298_p6 = por %p1286_p3, %p53_p2  ;;  %s131_s29 = sand.u32 1, %s1165_s17  }
  0x15   : > { %s699_s30 = sshll.u32 %s1181_s21, 10  ;;  %s652_s3 = sshll.u32 %s131_s29, 6 }
  0x16   : > { %s1542_s0 = sld [smem:[#allocation17_spill]]  ;;  %s135_s7 = scalar_lea.vmem [#allocation2], %s652_s3 }
  0x17   : > { %s142_s8 = sshll.u32 %s135_s7, 4  ;;  %p1310_p8 = pnand %p845_p7, %p49_p5  ;;  %s143_s8 = int_to_ptr.vmem [resolvable:$true] %s142_s8 }
  0x18   : > { %s132_s23 = scalar_lea.sflag [#allocation3], %s131_s29  ;;  %s994_s25 = scalar_lea.vmem %s143_s8, 1024 }
  0x19   : > { %p983_p9 = pneg %p1310_p8  ;;  %p995_p10 = scmp.ne.s32.totalorder %s143_s8, %s994_s25 }
  0x1a   : > { %s1187_s24 = smov [#allocation2]  }
  0x1b   : > { %p997_p11 = pnand %p995_p10, %p983_p9  ;;  %s999_s2 = sshll.u32 %s1187_s24, 4  ;;  %s1000_s2 = int_to_ptr.vmem [resolvable:$false] %s999_s2 }
  0x1c   : > { %s141_s6 = scalar_lea.hbm %s1542_s0, %s699_s30  ;;  %s1001_s30 = scalar_lea.vmem %s1000_s2, 2048 }
  0x1d   : > { %p998_p12 = pneg %p997_p11  ;;  %p1002_p13 = scmp.lt.s32.totalorder %s143_s8, %s1000_s2 }
  0x1e   : > { %p1003_p0 = scmp.lt.s32.totalorder %s1001_s30, %s994_s25 }
  0x20   : > { %p1004_p2 = por %p1003_p0, %p1002_p13 }
  0x22   : > { %p1005_p5 = pnand %p1004_p2, %p998_p12 }
  0x24   : > { %1008 = shalt.err (!%p1005_p5)
}
  0x25   : > { %s1527_s3 = smov 64   ;;  %s1528_s2 = smov 4  }
  0x26   : > { %837 = dma.hbm_to_vmem [thread:$0]  (!%p1310_p8), %s141_s6, 1024, %s143_s8, %s132_s23, %s1527_s3, %s1527_s3, %s1528_s2  }
  0x27   : > { %p657_p9 = scmp.ge.s32.totalorder %s1185_s22, 1  ;;  %p170_p10 = scmp.lt.s32.totalorder %s1185_s22, 17 }
  0x28   : > { %s649_s25 = sadd.s32 4294967294, %s1185_s22   ;;  %s30_s29 = sadd.s32 1, %s1177_s20 }
  0x29   : > { %p1323_p11 = pnand %p657_p9, %p170_p10  ;;  %s66_s4 = sadd.s32 1, %s1153_s14 }
  0x2a   : > { %p31_p12 = scmp.ge.s32.totalorder %s30_s29, 8  ;;  %p73_p13 = scmp.ne.s32.totalorder %s1153_s14, %s1149_s13 }
  0x2b   : > { %p79_p0 = scmp.ne.s32.totalorder %s1149_s13, %s1145_s12  ;;  %s94_s5 = sadd.s32 1, %s1141_s11 }
  0x2c   : > { %s1581_s29 = smov (%p31_p12, %s30_s29), 0  ;;  %s1546_s6 = sadd.s32 1, %s1181_s21 }
  0x2d   : > { %1545 = sst [smem:[#allocation13_spill]] %s1581_s29  ;;  %s1583_s6 = smov (!%p31_p12, %s1546_s6), %s1181_s21 }
  0x2e   : > { %s63_s7 = ssub.s32 %s1177_s20, %s1581_s29  ;;  %p1344_p8 = por %p73_p13, %p48_p1 }
  0x2f   : > { %p35_p2 = scmp.ge.s32.totalorder %s1583_s6, 2  ;;  %p64_p5 = scmp.eq.s32.totalorder %s63_s7, 0 }
  0x30   : > { %p1350_p9 = por %p79_p0, %p1286_p3  ;;  %p104_p10 = scmp.ne.s32.totalorder %s1141_s11, %s1137_s10 }
  0x31   : > { %s1585_s6 = smov (%p35_p2, %s1583_s6), 0  ;;  %p110_p13 = scmp.ne.s32.totalorder %s1137_s10, %s1133_s9 }
  0x32   : > { %1549 = sst [smem:[#allocation14_spill]] %s1585_s6  ;;  %s37_s23 = ssub.s32 %s1181_s21, %s1585_s6 }
  0x33   : > { %s1359_s15 = scalar_select %p64_p5, %s1153_s14, %s66_s4  }
  0x34   : > { %p1365_p1 = por %p1290_p4, %p104_p10  ;;  %p38_p12 = scmp.eq.s32.totalorder %s37_s23, 0 }
  0x35   : > { %1550 = sst [smem:[#allocation15_spill]] %s1359_s15  ;;  %s91_s26 = sor.u32 %s63_s7, %s37_s23 }
  0x36   : > { %s1551_s30 = scalar_select %p1365_p1, 1, 0 }
  0x37   : > { %p92_p3 = scmp.eq.s32.totalorder %s91_s26, 0  ;;  %s1553_s3 = sadd.s32 1, %s1165_s17 }
  0x38   : > { %1552 = sst [smem:[#allocation16_spill]] %s1551_s30  ;;  %p111_p0 = scmp.eq.s32.totalorder %s649_s25, 15 }
  0x39   : > { %s1374_s2 = scalar_select %p38_p12, %s1165_s17, %s1553_s3  }
  0x3a   : > { %s1377_s0 = scalar_select %p92_p3, %s1141_s11, %s94_s5  }
  0x3b   : > { %s152_s4 = sand.u32 1, %s1153_s14   ;;  %p1380_p2 = por %p111_p0, %p110_p13 }
  0x3c   : > { %s655_s29 = sshll.u32 %s152_s4, 6  ;;  %s656_s6 = sshll.u32 %s1177_s20, 6 }
  0x3d   : > { %s1554_s27 = scalar_select %p1380_p2, 1, 0 }
  0x3e   : > { %s156_s21 = scalar_lea.vmem [#allocation5], %s655_s29  ;;  %s161_s7 = scalar_lea.hbm %s1524_s1, %s656_s6 }
  0x3f   : > { %s162_s15 = sshll.u32 %s156_s21, 4  ;;  %p1392_p4 = pnand %p845_p7, %p1344_p8  ;;  %s163_s15 = int_to_ptr.vmem [resolvable:$true] %s162_s15 }
  0x40   : > { %s153_s25 = scalar_lea.sflag [#allocation6], %s152_s4  ;;  %s1022_s5 = scalar_lea.vmem %s163_s15, 1024 }
  0x41   : > { %p1011_p5 = pneg %p1392_p4  ;;  %p1023_p10 = scmp.ne.s32.totalorder %s163_s15, %s1022_s5 }
  0x42   : > { %s1190_s21 = smov [#allocation5]  }
  0x43   : > { %p1025_p12 = pnand %p1023_p10, %p1011_p5  ;;  %s1027_s29 = sshll.u32 %s1190_s21, 4  ;;  %s1028_s29 = int_to_ptr.vmem [resolvable:$false] %s1027_s29 }
  0x44   : > { %s1029_s18 = scalar_lea.vmem %s1028_s29, 2048  ;;  %p1030_p13 = scmp.lt.s32.totalorder %s163_s15, %s1028_s29 }
  0x45   : > { %p1026_p3 = pneg %p1025_p12  ;;  %p1031_p0 = scmp.lt.s32.totalorder %s1029_s18, %s1022_s5 }
  0x47   : > { %p1032_p2 = por %p1031_p0, %p1030_p13 }
  0x49   : > { %p1033_p1 = pnand %p1032_p2, %p1026_p3 }
  0x4b   : > { %1036 = shalt.err (!%p1033_p1)
}
  0x4c   : > { %s1191_s6 = smov 512   ;;  %s1556_s8 = smov 4  }
  0x4d   : > { %s1557_s23 = smov 64   ;;  %174 = sbr.rel (%p1323_p11) target bundleno = 344 (0x158), region = 28 }
  0x4e   : > { %840 = dma.hbm_to_vmem [thread:$0]  (!%p1392_p4), %s161_s7, 1024, %s163_s15, %s153_s25, %s1191_s6, %s1557_s23, %s1556_s8  }
  0x4f   : > { %s176_s30 = sand.u32 (!%p1323_p11), 1, %s1161_s16  }
  0x50   : > { %s658_s26 = sshll.u32 (!%p1323_p11), %s176_s30, 6  ;;  %s177_s4 = scalar_lea.sflag (!%p1323_p11), [#allocation3], %s176_s30 }
  0x51   : > { %s1405_s21 = scalar_lea.vmem (!%p1323_p11), [#allocation2], %s658_s26 }
  0x52   : > { %1120 = dma.done.wait (%p1298_p6), %s177_s4, 1024  }
  0x53   : > { %1122 = vsyncadd (%p1298_p6), %s177_s4, 4294966272  ;;  %s185_s3 = sand.u32 1, %s1149_s13  }
  0x54   : > { %s659_s5 = sshll.u32 %s185_s3, 6  ;;  %s186_s15 = scalar_lea.sflag [#allocation6], %s185_s3 }
  0x55   : > { %s1412_s7 = scalar_lea.vmem [#allocation5], %s659_s5 }
  0x56   : > { %1124 = dma.done.wait (%p1350_p9), %s186_s15, 1024  }
  0x57   : > { %1126 = vsyncadd (%p1350_p9), %s186_s15, 4294966272  ;;  %v965_v0 = vld [vmem:[%s1412_s7 + $0x38] sm:$0xff]   ;;  %v966_v1 = vld [vmem:[%s1412_s7 + $0x30] sm:$0xff]   ;;  %s212_s28 = sand.u32 1, %s1137_s10   ;;  %s1558_s12 = sld [smem:[#allocation11_spill]] }
  0x58   : > { %780 = vmatprep.subr.bf16.mxu0 %v965_v0  ;;  %812 = vmatprep.subr.bf16.mxu1 %v965_v0  ;;  %v967_v2 = vld [vmem:[%s1412_s7 + $0x28] sm:$0xff]   ;;  %v968_v3 = vld [vmem:[%s1412_s7 + $0x20] sm:$0xff]   ;;  %v969_v6 = vld [vmem:[%s1412_s7 + $0x18] sm:$0xff]   ;;  %s660_s24 = sshll.u32 %s212_s28, 6  ;;  %s716_s25 = sshll.u32 %s1173_s19, 7 }
  0x59   : > { %781 = vmatpush3.bf16.msra.mxu0 %v965_v0  ;;  %820 = vmatpush3.bf16.msra.mxu1 %v965_v0  ;;  %v973_v4 = vld [vmem:[%s1405_s21] sm:$0xff]   ;;  %v970_v7 = vld [vmem:[%s1412_s7 + $0x10] sm:$0xff]   ;;  %v971_v8 = vld [vmem:[%s1412_s7 + $0x8] sm:$0xff]   ;;  %s214_s29 = scalar_lea.vmem [#allocation7], %s660_s24  ;;  %s1559_s19 = sld [smem:[#allocation16_spill]] }
  0x5a   : > { %782 = vmatprep.subr.bf16.mxu0 %v966_v1  ;;  %813 = vmatprep.subr.bf16.mxu1 %v966_v1  ;;  %v974_v5 = vld [vmem:[%s1405_s21 + $0x20] sm:$0xff]   ;;  %v975_v10 = vld [vmem:[%s1405_s21 + $0x8] sm:$0xff]   ;;  %v977_v12 = vld [vmem:[%s1405_s21 + $0x10] sm:$0xff]   ;;  %s539_s6 = sshll.u32 %s214_s29, 4  ;;  %s1560_s26 = sld [smem:[#allocation18_spill]]  ;;  %s1439_s6 = int_to_ptr.vmem [resolvable:$true] %s539_s6 }
  0x5b   : > { %796 = vmatprep.mubr.bf16.mxu0 %v973_v4  ;;  %804 = vmatprep.mubr.bf16.mxu1 %v974_v5  ;;  %v972_v9 = vld [vmem:[%s1412_s7] sm:$0xff]   ;;  %v976_v11 = vld [vmem:[%s1405_s21 + $0x28] sm:$0xff]   ;;  %v978_v13 = vld [vmem:[%s1405_s21 + $0x30] sm:$0xff]   ;;  %s1037_s3 = scalar_lea.vmem %s1439_s6, 1024  ;;  %s1192_s5 = smov [#allocation7]  }
  0x5c   : > { %v979_v14 = vld [vmem:[%s1405_s21 + $0x18] sm:$0xff]   ;;  %p1038_p6 = scmp.ne.s32.totalorder %s1439_s6, %s1037_s3  ;;  %s1041_s15 = sshll.u32 %s1192_s5, 4  ;;  %s1042_s15 = int_to_ptr.vmem [resolvable:$false] %s1041_s15 }
  0x5d   : > { %783 = vmatpush3.bf16.msra.mxu0 %v966_v1  ;;  %821 = vmatpush3.bf16.msra.mxu1 %v966_v1  ;;  %v980_v15 = vld [vmem:[%s1405_s21 + $0x38] sm:$0xff]   ;;  %s536_s18 = sadd.s32 %s1558_s12, %s716_s25  ;;  %s1448_s21 = scalar_lea.sflag [#allocation4], %s212_s28 }
  0x5e   : > { %784 = vmatprep.subr.bf16.mxu0 %v967_v2  ;;  %814 = vmatprep.subr.bf16.mxu1 %v967_v2  ;;  %s696_s8 = sshll.u32 %s536_s18, 6  ;;  %s1043_s7 = scalar_lea.vmem %s1042_s15, 2048 }
  0x5f   : > { %p1561_p7 = scmp.ne.s32.totalorder %s1559_s19, 0  ;;  %p1044_p9 = scmp.lt.s32.totalorder %s1439_s6, %s1042_s15 }
  0x60   : > { %s1444_s4 = scalar_lea.hbm %s1560_s26, %s696_s8  ;;  %p1045_p1 = scmp.lt.s32.totalorder %s1043_s7, %s1037_s3 }
  0x61   : > { %785 = vmatpush3.bf16.msra.mxu0 %v967_v2  ;;  %822 = vmatpush3.bf16.msra.mxu1 %v967_v2  ;;  %p1039_p11 = pnand %p1038_p6, %p1561_p7 }
  0x62   : > { %786 = vmatprep.subr.bf16.mxu0 %v968_v3  ;;  %815 = vmatprep.subr.bf16.mxu1 %v968_v3  ;;  %p1046_p2 = por %p1045_p1, %p1044_p9 }
  0x63   : > { %p1040_p8 = pneg %p1039_p11 }
  0x65   : > { %787 = vmatpush3.bf16.msra.mxu0 %v968_v3  ;;  %823 = vmatpush3.bf16.msra.mxu1 %v968_v3  ;;  %p1047_p4 = pnand %p1046_p2, %p1040_p8 }
  0x66   : > { %788 = vmatprep.subr.bf16.mxu0 %v969_v6  ;;  %816 = vmatprep.subr.bf16.mxu1 %v969_v6 }
  0x69   : > { %789 = vmatpush3.bf16.msra.mxu0 %v969_v6  ;;  %824 = vmatpush3.bf16.msra.mxu1 %v969_v6 }
  0x6a   : > { %790 = vmatprep.subr.bf16.mxu0 %v970_v7  ;;  %817 = vmatprep.subr.bf16.mxu1 %v970_v7 }
  0x6d   : > { %791 = vmatpush3.bf16.msra.mxu0 %v970_v7  ;;  %825 = vmatpush3.bf16.msra.mxu1 %v970_v7 }
  0x6e   : > { %792 = vmatprep.subr.bf16.mxu0 %v971_v8  ;;  %818 = vmatprep.subr.bf16.mxu1 %v971_v8 }
  0x71   : > { %793 = vmatpush3.bf16.msra.mxu0 %v971_v8  ;;  %826 = vmatpush3.bf16.msra.mxu1 %v971_v8 }
  0x72   : > { %794 = vmatprep.subr.bf16.mxu0 %v972_v9  ;;  %819 = vmatprep.subr.bf16.mxu1 %v972_v9 }
  0x75   : > { %795 = vmatpush3.bf16.msra.mxu0 %v972_v9  ;;  %827 = vmatpush3.bf16.msra.mxu1 %v972_v9 }
  0x78   : > { %797 = vmatmul.mubr.bf16.vlgmr.msra.gmra.mxu0 %v975_v10  ;;  %805 = vmatmul.mubr.bf16.vlgmr.msra.gmra.mxu1 %v976_v11 }
  0x79   : > { %800 = vmatprep.mubr.bf16.mxu0 %v977_v12  ;;  %808 = vmatprep.mubr.bf16.mxu1 %v978_v13 }
  0x80   : > { %801 = vmatmul.mubr.bf16.gmra.mxu0 %v979_v14  ;;  %809 = vmatmul.mubr.bf16.gmra.mxu1 %v980_v15 }
 0x138   : > { %v798_v16 = vpop.f32.mrf.mxu0  ;;  %v806_v17 = vpop.f32.mrf.mxu1 }
 0x13a   : > { %v380_v18 = vpop.f32.mrf.mxu0  ;;  %v412_v19 = vpop.f32.mrf.mxu1 }
 0x13c   : > { %v799_v20 = vpop.f32.mrf.mxu0  ;;  %v807_v21 = vpop.f32.mrf.mxu1 }
 0x13d   : > { %v725_v22 = vpack.c.bf16 %v799_v20, %v798_v16  ;;  %v745_v23 = vpack.c.bf16 %v807_v21, %v806_v17 }
 0x13e   : > { %v383_v24 = vpop.f32.mrf.mxu0  ;;  %v415_v25 = vpop.f32.mrf.mxu1 }
 0x13f   : > { %757 = vst [vmem:[%s214_s29 + $0x8] sm:$0xff] %v725_v22   ;;  %761 = vst [vmem:[%s214_s29 + $0x28] sm:$0xff] %v745_v23   ;;  %v720_v26 = vpack.c.bf16 %v383_v24, %v380_v18  ;;  %v740_v27 = vpack.c.bf16 %v415_v25, %v412_v19 }
 0x140   : > { %v802_v28 = vpop.f32.mrf.mxu0  ;;  %v810_v29 = vpop.f32.mrf.mxu1 }
 0x141   : > { %721 = vst [vmem:[%s214_s29] sm:$0xff] %v720_v26   ;;  %760 = vst [vmem:[%s214_s29 + $0x20] sm:$0xff] %v740_v27  }
 0x142   : > { %v396_v30 = vpop.f32.mrf.mxu0  ;;  %v428_v31 = vpop.f32.mrf.mxu1 }
 0x144   : > { %v803_v32 = vpop.f32.mrf.mxu0  ;;  %v811_v33 = vpop.f32.mrf.mxu1 }
 0x145   : > { %v735_v34 = vpack.c.bf16 %v803_v32, %v802_v28  ;;  %v755_v35 = vpack.c.bf16 %v811_v33, %v810_v29 }
 0x146   : > { %v399_v36 = vpop.f32.mrf.mxu0  ;;  %v431_v37 = vpop.f32.mrf.mxu1 }
 0x147   : > { %759 = vst [vmem:[%s214_s29 + $0x18] sm:$0xff] %v735_v34   ;;  %763 = vst [vmem:[%s214_s29 + $0x38] sm:$0xff] %v755_v35   ;;  %v730_v38 = vpack.c.bf16 %v399_v36, %v396_v30  ;;  %v750_v39 = vpack.c.bf16 %v431_v37, %v428_v31 }
 0x149   : > { %758 = vst [vmem:[%s214_s29 + $0x10] sm:$0xff] %v730_v38   ;;  %762 = vst [vmem:[%s214_s29 + $0x30] sm:$0xff] %v750_v39  }
 0x14a   : > { %1050 = shalt.err (!%p1047_p4)
}
 0x14b   : > { %s1051_s28 = scalar_lea.hbm %s1444_s4, 1024  ;;  %s1055_s25 = scalar_lea.hbm %s1560_s26, 16384 }
 0x14c   : > { %p1052_p5 = scmp.ne.s32.totalorder %s1444_s4, %s1051_s28  ;;  %p1056_p3 = scmp.lt.s32.totalorder %s1444_s4, %s1560_s26 }
 0x14d   : > { %p1057_p13 = scmp.lt.s32.totalorder %s1055_s25, %s1051_s28 }
 0x14e   : > { %p1053_p10 = pnand %p1052_p5, %p1561_p7 }
 0x14f   : > { %p1058_p0 = por %p1057_p13, %p1056_p3 }
 0x150   : > { %p1054_p12 = pneg %p1053_p10 }
 0x152   : > { %p1059_p6 = pnand %p1058_p0, %p1054_p12 }
 0x154   : > { %1062 = shalt.err (!%p1059_p6)
}
 0x155   : > { %s1193_s8 = smov 64   ;;  %s1194_s23 = smov 512  }
 0x156   : > { %s1195_s30 = smov 4  }
 0x157   : > { %832 = dma.vmem_to_hbm [thread:$0]  (%p1561_p7), %s1439_s6, 1024, %s1444_s4, %s1448_s21, %s1193_s8, %s1194_s23, %s1195_s30  }
 0x158 PF: > { %p846_p11 = scmp.ge.s32.totalorder %s1185_s22, 2  ;;  %s554_s3 = sand.u32 1, %s1133_s9  }
 0x159   : > { %p1562_p8 = scmp.ne.s32.totalorder %s1554_s27, 0  ;;  %s555_s5 = scalar_lea.sflag [#allocation4], %s554_s3 }
 0x15b   : > { %p842_p9 = pnand %p846_p11, %p1562_p8 }
 0x15d   : > { %p843_p1 = pneg %p842_p9 }
 0x15f   : > { %1128 = dma.done.wait (%p843_p1), %s555_s5, 1024  }
 0x160   : > { %1130 = vsyncadd (%p843_p1), %s555_s5, 4294966272  ;;  %s21_s22 = sadd.s32 1, %s1185_s22   ;;  %s1564_s6 = sld [smem:[#allocation15_spill]] }
 0x161   : > { %p1476_p2 = scmp.ge.s32.totalorder %s21_s22, 18   ;;  %s1565_s19 = sld [smem:[#allocation12_spill]] }
 0x162   : > { %s1566_s27 = sld [smem:[#allocation13_spill]]  ;;  %s1569_s9 = smov %s1137_s10 }
 0x163   : > { %s1567_s21 = sld [smem:[#allocation14_spill]]  ;;  %s1570_s10 = smov %s1141_s11 }
 0x164   : > { %s1571_s11 = smov %s1377_s0  ;;  %s1572_s12 = smov %s1149_s13 }
 0x165   : > { %s1573_s13 = smov %s1153_s14  ;;  %s1575_s15 = smov %s1161_s16 }
 0x166   : > { %s1574_s14 = smov %s1564_s6  ;;  %s1576_s16 = smov %s1165_s17 }
 0x167   : > { %s1577_s17 = smov %s1374_s2  ;;  %s1578_s18 = smov %s1177_s20 }
 0x168   : > { %s1579_s20 = smov %s1566_s27  ;;  %20 = sbr.rel (!%p1476_p2) target bundleno = 15 (0xf), region = 86 }
 0x16d   :  { %560 = vsyncpa [#allocation3], 1 }
 0x16e   :  { %562 = vsyncpa [#allocation3 + $0x1], 1 }
 0x16f   :  { %563 = vsyncpa [#allocation6], 1 }
 0x170   :  { %565 = vsyncpa [#allocation6 + $0x1], 1 }
 0x171   :  { %566 = vsyncpa [#allocation4], 1 }
 0x172   :  { %568 = vsyncpa [#allocation4 + $0x1], 1 }

</bundles_post_ra>
